<compile_context>
chip_gen: v7x
topology: tpu7x:2x2x1
jax: 0.10.0
libtpu: 0.0.40
codegen_flags: <defaults>
</compile_context>

<pallas_src>
import functools

import jax
import jax.numpy as jnp
from jax.experimental import pallas as pl
from jax.experimental.pallas import tpu as pltpu


# ---------------------------------------------------------------------------
# helpers
# ---------------------------------------------------------------------------
def _pick_q_tile(S):
    """Largest q-tile that divides S (multiple of 256 preferred for v6e/v7x MXU)."""
    for cand in (512, 256, 128, 64, 32, 16, 8):
        if S % cand == 0:
            return cand
    return S  # tiny / odd S: single q tile (block == full dim, layout-legal)


def _vmem_limit_bytes(S, tq, dim_in, dim_out, itemsize):
    """Scoped-VMEM request: double-buffered blocks + in-kernel f32 temporaries."""
    blocks = (tq * dim_in            # x q-tile
              + S * dim_in           # x full row (keys)
              + 2 * dim_in * dim_out # w_in, w_out
              + dim_in + dim_out     # biases
              + tq * dim_in          # output tile
              + tq * S)              # attn tile
    io = 2 * blocks * itemsize                       # double-buffering
    interm = (2 * S * dim_out + 3 * tq * S + 2 * tq * dim_out) * 4   # f32 temps
    need = 2 * (io + interm)                         # headroom
    return int(min(max(need, 16 * 1024 * 1024), 64 * 1024 * 1024))


def _softmax_rows_f32(s):
    m = jnp.max(s, axis=-1, keepdims=True)
    p = jnp.exp(s - m)
    denom = jnp.sum(p, axis=-1, keepdims=True)
    # Exact division: the attention map is a user-visible probability
    # distribution, so rows must sum to 1 (no approx EUP reciprocal here).
    return p / denom


# ---------------------------------------------------------------------------
# Fused kernel: project_in -> self-attention -> project_out (dim_in != dim_out)
# One grid step = one (batch, q-tile).  Keys = full batch row, recomputed from
# the resident (S, dim_in) x block (cheap: O(S*d_in*d_out) vs O(tq*S*d) attn).
# ---------------------------------------------------------------------------
def _fused_project_attn_kernel(xq_ref, xk_ref, w_in_ref, b_in_ref,
                               w_out_ref, b_out_ref, o_ref, a_ref, *, scale):
    xq = xq_ref[0]                                   # (tq, dim_in)
    xk = xk_ref[0]                                   # (S,  dim_in)
    w_in = w_in_ref[...].astype(jnp.bfloat16)
    w_out = w_out_ref[...].astype(jnp.bfloat16)

    # ---- project_in: bf16 MXU operands, f32 accumulation ----
    h_q = jnp.dot(xq.astype(jnp.bfloat16), w_in,
                  preferred_element_type=jnp.float32) + b_in_ref[...]
    h_k = jnp.dot(xk.astype(jnp.bfloat16), w_in,
                  preferred_element_type=jnp.float32) + b_in_ref[...]

    # fold the softmax scale into the small (tq, d) operand, not the (tq, S) scores
    hq_b = (h_q * scale).astype(jnp.bfloat16)
    hk_b = h_k.astype(jnp.bfloat16)

    # ---- scores: contraction on the feature axis (no transpose copy) ----
    s = jnp.einsum("qd,kd->qk", hq_b, hk_b,
                   preferred_element_type=jnp.float32)           # (tq, S) f32
    attn = _softmax_rows_f32(s)                                  # f32 softmax

    # ---- PV + project_out ----
    o = jnp.dot(attn.astype(jnp.bfloat16), hk_b,
                preferred_element_type=jnp.float32)              # (tq, dim_out)
    y = jnp.dot(o.astype(jnp.bfloat16), w_out,
                preferred_element_type=jnp.float32) + b_out_ref[...]

    o_ref[0] = y.astype(o_ref.dtype)
    a_ref[0] = attn.astype(a_ref.dtype)


def fused_project_in_out_attention(x, w_in, b_in, w_out, b_out, attn_dtype=None):
    B, S, dim_in = x.shape
    dim_out = w_in.shape[1]
    scale = float(dim_out) ** -0.5
    tq = _pick_q_tile(S)
    nq = S // tq if S % tq == 0 else 1
    if S % tq != 0:
        tq = S
    attn_dtype = x.dtype if attn_dtype is None else attn_dtype

    return pl.pallas_call(
        functools.partial(_fused_project_attn_kernel, scale=scale),
        grid=(B, nq),
        out_shape=(
            jax.ShapeDtypeStruct((B, S, dim_in), x.dtype),
            jax.ShapeDtypeStruct((B, S, S), attn_dtype),
        ),
        in_specs=[
            pl.BlockSpec((1, tq, dim_in), lambda b, q: (b, q, 0)),   # q tile
            pl.BlockSpec((1, S, dim_in), lambda b, q: (b, 0, 0)),    # full row (keys)
            pl.BlockSpec((dim_in, dim_out), lambda b, q: (0, 0)),
            pl.BlockSpec((1, dim_out), lambda b, q: (0, 0)),
            pl.BlockSpec((dim_out, dim_in), lambda b, q: (0, 0)),
            pl.BlockSpec((1, dim_in), lambda b, q: (0, 0)),
        ],
        out_specs=(
            pl.BlockSpec((1, tq, dim_in), lambda b, q: (b, q, 0)),
            pl.BlockSpec((1, tq, S), lambda b, q: (b, q, 0)),
        ),
        compiler_params=pltpu.CompilerParams(
            dimension_semantics=("parallel", "parallel"),
            vmem_limit_bytes=_vmem_limit_bytes(S, tq, dim_in, dim_out,
                                               x.dtype.itemsize),
        ),
    )(x, x, w_in, b_in, w_out, b_out)


# ---------------------------------------------------------------------------
# Identity path (dim_in == dim_out): just the attention fn, same tiling.
# ---------------------------------------------------------------------------
def _attn_only_kernel(xq_ref, xk_ref, o_ref, a_ref, *, scale):
    xq = (xq_ref[0].astype(jnp.float32) * scale).astype(jnp.bfloat16)
    xk = xk_ref[0].astype(jnp.bfloat16)
    s = jnp.einsum("qd,kd->qk", xq, xk, preferred_element_type=jnp.float32)
    attn = _softmax_rows_f32(s)
    o = jnp.dot(attn.astype(jnp.bfloat16), xk, preferred_element_type=jnp.float32)
    o_ref[0] = o.astype(o_ref.dtype)
    a_ref[0] = attn.astype(a_ref.dtype)


def pallas_self_attention(x, attn_dtype=None):
    B, S, D = x.shape
    scale = float(D) ** -0.5
    tq = _pick_q_tile(S)
    nq = S // tq if S % tq == 0 else 1
    if S % tq != 0:
        tq = S
    attn_dtype = x.dtype if attn_dtype is None else attn_dtype

    return pl.pallas_call(
        functools.partial(_attn_only_kernel, scale=scale),
        grid=(B, nq),
        out_shape=(
            jax.ShapeDtypeStruct((B, S, D), x.dtype),
            jax.ShapeDtypeStruct((B, S, S), attn_dtype),
        ),
        in_specs=[
            pl.BlockSpec((1, tq, D), lambda b, q: (b, q, 0)),
            pl.BlockSpec((1, S, D), lambda b, q: (b, 0, 0)),
        ],
        out_specs=(
            pl.BlockSpec((1, tq, D), lambda b, q: (b, q, 0)),
            pl.BlockSpec((1, tq, S), lambda b, q: (b, q, 0)),
        ),
        compiler_params=pltpu.CompilerParams(
            dimension_semantics=("parallel", "parallel"),
            vmem_limit_bytes=_vmem_limit_bytes(S, tq, D, D, x.dtype.itemsize),
        ),
    )(x, x)


# ---------------------------------------------------------------------------
# ProjectInOut forward
# ---------------------------------------------------------------------------
def project_in_out_forward(x, params):
    if params["w_in"] is None:          # dim_in == dim_out -> Identity projections
        return pallas_self_attention(x)
    return fused_project_in_out_attention(
        x, params["w_in"], params["b_in"], params["w_out"], params["b_out"])


def init_params(key, dim_in, dim_out, dtype=jnp.float32):
    """Deterministic init of the two nn.Linear layers (or Identity)."""
    if dim_in == dim_out:
        return {"w_in": None, "b_in": None, "w_out": None, "b_out": None}
    k1, k2, k3, k4 = jax.random.split(key, 4)
    # nn.Linear(dim_in, dim_out): weight (dim_out, dim_in), bias (dim_out,)
    # stored pre-transposed as (dim_in, dim_out) for x @ W.
    w_in = jax.random.normal(k1, (dim_in, dim_out), dtype) * 0.02
    b_in = jax.random.normal(k2, (1, dim_out), dtype) * 0.02
    w_out = jax.random.normal(k3, (dim_out, dim_in), dtype) * 0.02
    b_out = jax.random.normal(k4, (1, dim_in), dtype) * 0.02
    return {"w_in": w_in, "b_in": b_in, "w_out": w_out, "b_out": b_out}


if __name__ == "__main__":
    B, S, DIM_IN, DIM_OUT = 2, 8, 32, 64
    # NOTE: demo shapes are a smoke test well below one MXU tile; production
    # sizing should keep S / dims at multiples of 128 for lane-dense stores.

    key = jax.random.PRNGKey(0)
    kx, kp = jax.random.split(key)
    x = jax.random.normal(kx, (B, S, DIM_IN), jnp.float32)
    params = init_params(kp, DIM_IN, DIM_OUT)

    out, attn = project_in_out_forward(x, params)
    jax.block_until_ready((out, attn))
    assert out.shape == (B, S, DIM_IN), out.shape
    assert attn.shape == (B, S, S), attn.shape

    # Reference mirrors the kernel's bf16-operand / f32-accumulate policy so the
    # comparison checks the Pallas mechanics tightly.
    def ref_proj(xx, prm):
        w_in = prm["w_in"].astype(jnp.bfloat16)
        w_out = prm["w_out"].astype(jnp.bfloat16)
        h = jnp.dot(xx.astype(jnp.bfloat16), w_in,
                    preferred_element_type=jnp.float32) + prm["b_in"]
        hq = (h * (DIM_OUT ** -0.5)).astype(jnp.bfloat16)
        hk = h.astype(jnp.bfloat16)
        s = jnp.einsum("bqd,bkd->bqk", hq, hk, preferred_element_type=jnp.float32)
        a = jax.nn.softmax(s, axis=-1)
        o = jnp.einsum("bqk,bkd->bqd", a.astype(jnp.bfloat16), hk,
                       preferred_element_type=jnp.float32)
        y = jnp.dot(o.astype(jnp.bfloat16), w_out,
                    preferred_element_type=jnp.float32) + prm["b_out"]
        return y, a

    ref_out, ref_attn = ref_proj(x, params)
    assert jnp.allclose(out, ref_out, atol=1e-2, rtol=1e-2)
    assert jnp.allclose(attn, ref_attn, atol=1e-2, rtol=1e-2)
    assert jnp.allclose(jnp.sum(attn, axis=-1), 1.0, atol=1e-3)  # exact-div softmax

    # Identity case (dim_in == dim_out): projections are nn.Identity().
    x_id = jax.random.normal(kx, (B, S, DIM_OUT), jnp.float32)
    params_id = init_params(kp, DIM_OUT, DIM_OUT)
    out_id, attn_id = project_in_out_forward(x_id, params_id)
    jax.block_until_ready((out_id, attn_id))

    xq_r = (x_id * (DIM_OUT ** -0.5)).astype(jnp.bfloat16)
    xk_r = x_id.astype(jnp.bfloat16)
    s_ref = jnp.einsum("bqd,bkd->bqk", xq_r, xk_r, preferred_element_type=jnp.float32)
    a_ref = jax.nn.softmax(s_ref, axis=-1)
    o_ref = jnp.einsum("bqk,bkd->bqd", a_ref.astype(jnp.bfloat16), xk_r,
                       preferred_element_type=jnp.float32)
    assert jnp.allclose(out_id, o_ref, atol=1e-2, rtol=1e-2)
    assert jnp.allclose(attn_id, a_ref, atol=1e-2, rtol=1e-2)
    assert jnp.allclose(jnp.sum(attn_id, axis=-1), 1.0, atol=1e-3)

    print("KERNEL_OK")
</pallas_src>

<mosaic_0001>
module attributes {stable_mosaic.version = 11 : i64} {
  func.func @_fused_project_attn_kernel(%arg0: i32, %arg1: i32, %arg2: memref<1x8x32xf32, #tpu.memory_space<vmem>>, %arg3: memref<1x8x32xf32, #tpu.memory_space<vmem>>, %arg4: memref<32x64xf32, #tpu.memory_space<vmem>>, %arg5: memref<1x64xf32, #tpu.memory_space<vmem>>, %arg6: memref<64x32xf32, #tpu.memory_space<vmem>>, %arg7: memref<1x32xf32, #tpu.memory_space<vmem>>, %arg8: memref<1x8x32xf32, #tpu.memory_space<vmem>>, %arg9: memref<1x8x8xf32, #tpu.memory_space<vmem>>) attributes {dimension_semantics = [#tpu.dimension_semantics<parallel>, #tpu.dimension_semantics<parallel>], iteration_bounds = array<i64: 2, 1>, scalar_prefetch = 0 : i64, scratch_operands = 0 : i64, tpu.core_type = #tpu.core_type<tc>, window_params = [{transform_indices = @transform_0, window_bounds = array<i64: 1, 8, 32>}, {transform_indices = @transform_1, window_bounds = array<i64: 1, 8, 32>}, {pipeline_mode = #tpu.pipeline_mode<synchronous>, transform_indices = @transform_2, window_bounds = array<i64: 32, 64>}, {pipeline_mode = #tpu.pipeline_mode<synchronous>, transform_indices = @transform_3, window_bounds = array<i64: 1, 64>}, {pipeline_mode = #tpu.pipeline_mode<synchronous>, transform_indices = @transform_4, window_bounds = array<i64: 64, 32>}, {pipeline_mode = #tpu.pipeline_mode<synchronous>, transform_indices = @transform_5, window_bounds = array<i64: 1, 32>}, {transform_indices = @transform_6, window_bounds = array<i64: 1, 8, 32>}, {transform_indices = @transform_7, window_bounds = array<i64: 1, 8, 8>}]} {
    %c0 = arith.constant 0 : index
    %c0_0 = arith.constant 0 : index
    %c0_1 = arith.constant 0 : index
    %0 = vector.load %arg2[%c0, %c0_0, %c0_1] : memref<1x8x32xf32, #tpu.memory_space<vmem>>, vector<1x8x32xf32>
    %1 = vector.shape_cast %0 : vector<1x8x32xf32> to vector<8x32xf32>
    %c0_2 = arith.constant 0 : index
    %c0_3 = arith.constant 0 : index
    %c0_4 = arith.constant 0 : index
    %2 = vector.load %arg3[%c0_2, %c0_3, %c0_4] : memref<1x8x32xf32, #tpu.memory_space<vmem>>, vector<1x8x32xf32>
    %3 = vector.shape_cast %2 : vector<1x8x32xf32> to vector<8x32xf32>
    %c0_5 = arith.constant 0 : index
    %c0_6 = arith.constant 0 : index
    %4 = vector.load %arg4[%c0_5, %c0_6] : memref<32x64xf32, #tpu.memory_space<vmem>>, vector<32x64xf32>
    %5 = arith.truncf %4 : vector<32x64xf32> to vector<32x64xbf16>
    %c0_7 = arith.constant 0 : index
    %c0_8 = arith.constant 0 : index
    %6 = vector.load %arg6[%c0_7, %c0_8] : memref<64x32xf32, #tpu.memory_space<vmem>>, vector<64x32xf32>
    %7 = arith.truncf %6 : vector<64x32xf32> to vector<64x32xbf16>
    %8 = arith.truncf %1 : vector<8x32xf32> to vector<8x32xbf16>
    %cst = arith.constant dense<0.000000e+00> : vector<8x64xf32>
    %9 = tpu.matmul %8, %5, %cst {dimension_numbers = #tpu.dot_dimension_numbers<[1], [0], [0], [1], [0, 0, 1, 1], [], []>} : vector<8x32xbf16>, vector<32x64xbf16>, vector<8x64xf32> -> vector<8x64xf32>
    %c0_9 = arith.constant 0 : index
    %c0_10 = arith.constant 0 : index
    %10 = vector.load %arg5[%c0_9, %c0_10] : memref<1x64xf32, #tpu.memory_space<vmem>>, vector<1x64xf32>
    %11 = vector.broadcast %10 : vector<1x64xf32> to vector<8x64xf32>
    %12 = arith.addf %9, %11 : vector<8x64xf32>
    %13 = arith.truncf %3 : vector<8x32xf32> to vector<8x32xbf16>
    %cst_11 = arith.constant dense<0.000000e+00> : vector<8x64xf32>
    %14 = tpu.matmul %13, %5, %cst_11 {dimension_numbers = #tpu.dot_dimension_numbers<[1], [0], [0], [1], [0, 0, 1, 1], [], []>} : vector<8x32xbf16>, vector<32x64xbf16>, vector<8x64xf32> -> vector<8x64xf32>
    %c0_12 = arith.constant 0 : index
    %c0_13 = arith.constant 0 : index
    %15 = vector.load %arg5[%c0_12, %c0_13] : memref<1x64xf32, #tpu.memory_space<vmem>>, vector<1x64xf32>
    %16 = vector.broadcast %15 : vector<1x64xf32> to vector<8x64xf32>
    %17 = arith.addf %14, %16 : vector<8x64xf32>
    %cst_14 = arith.constant 1.250000e-01 : f32
    %18 = vector.broadcast %cst_14 : f32 to vector<8x64xf32>
    %19 = arith.mulf %12, %18 : vector<8x64xf32>
    %20 = arith.truncf %19 : vector<8x64xf32> to vector<8x64xbf16>
    %21 = arith.truncf %17 : vector<8x64xf32> to vector<8x64xbf16>
    "tpu.trace_start"() <{level = 10 : i32, message = "qd,kd->qk"}> : () -> ()
    %cst_15 = arith.constant dense<0.000000e+00> : vector<8x8xf32>
    %22 = tpu.matmul %20, %21, %cst_15 {dimension_numbers = #tpu.dot_dimension_numbers<[1], [1], [0], [0], [0, 0, 1, 0], [], []>} : vector<8x64xbf16>, vector<8x64xbf16>, vector<8x8xf32> -> vector<8x8xf32>
    "tpu.trace_stop"() : () -> ()
    %cst_16 = arith.constant dense<0xFF800000> : vector<8xf32>
    %23 = vector.multi_reduction <maximumf>, %22, %cst_16 [1] : vector<8x8xf32> to vector<8xf32>
    %24 = vector.shape_cast %23 : vector<8xf32> to vector<8x1xf32>
    %25 = vector.broadcast %24 : vector<8x1xf32> to vector<8x8xf32>
    %26 = arith.subf %22, %25 : vector<8x8xf32>
    %27 = math.exp %26 : vector<8x8xf32>
    %cst_17 = arith.constant dense<0.000000e+00> : vector<8xf32>
    %28 = vector.multi_reduction <add>, %27, %cst_17 [1] : vector<8x8xf32> to vector<8xf32>
    %29 = vector.shape_cast %28 : vector<8xf32> to vector<8x1xf32>
    %30 = vector.broadcast %29 : vector<8x1xf32> to vector<8x8xf32>
    %31 = arith.divf %27, %30 : vector<8x8xf32>
    %32 = arith.truncf %31 : vector<8x8xf32> to vector<8x8xbf16>
    %cst_18 = arith.constant dense<0.000000e+00> : vector<8x64xf32>
    %33 = tpu.matmul %32, %21, %cst_18 {dimension_numbers = #tpu.dot_dimension_numbers<[1], [0], [0], [1], [0, 0, 1, 1], [], []>} : vector<8x8xbf16>, vector<8x64xbf16>, vector<8x64xf32> -> vector<8x64xf32>
    %34 = arith.truncf %33 : vector<8x64xf32> to vector<8x64xbf16>
    %cst_19 = arith.constant dense<0.000000e+00> : vector<8x32xf32>
    %35 = tpu.matmul %34, %7, %cst_19 {dimension_numbers = #tpu.dot_dimension_numbers<[1], [0], [0], [1], [0, 0, 1, 1], [], []>} : vector<8x64xbf16>, vector<64x32xbf16>, vector<8x32xf32> -> vector<8x32xf32>
    %c0_20 = arith.constant 0 : index
    %c0_21 = arith.constant 0 : index
    %36 = vector.load %arg7[%c0_20, %c0_21] : memref<1x32xf32, #tpu.memory_space<vmem>>, vector<1x32xf32>
    %37 = vector.broadcast %36 : vector<1x32xf32> to vector<8x32xf32>
    %38 = arith.addf %35, %37 : vector<8x32xf32>
    %c0_22 = arith.constant 0 : index
    %c0_23 = arith.constant 0 : index
    %c0_24 = arith.constant 0 : index
    %39 = vector.load %arg8[%c0_22, %c0_23, %c0_24] : memref<1x8x32xf32, #tpu.memory_space<vmem>>, vector<1x8x32xf32>
    %40 = vector.shape_cast %39 : vector<1x8x32xf32> to vector<8x32xf32>
    %41 = vector.shape_cast %38 : vector<8x32xf32> to vector<1x8x32xf32>
    tpu.vector_store %arg8[%c0_22, %c0_23, %c0_24], %41 {strides = array<i32>} : memref<1x8x32xf32, #tpu.memory_space<vmem>>, vector<1x8x32xf32>,
    %c0_25 = arith.constant 0 : index
    %c0_26 = arith.constant 0 : index
    %c0_27 = arith.constant 0 : index
    %42 = vector.load %arg9[%c0_25, %c0_26, %c0_27] : memref<1x8x8xf32, #tpu.memory_space<vmem>>, vector<1x8x8xf32>
    %43 = vector.shape_cast %42 : vector<1x8x8xf32> to vector<8x8xf32>
    %44 = vector.shape_cast %31 : vector<8x8xf32> to vector<1x8x8xf32>
    tpu.vector_store %arg9[%c0_25, %c0_26, %c0_27], %44 {strides = array<i32>} : memref<1x8x8xf32, #tpu.memory_space<vmem>>, vector<1x8x8xf32>,
    return
  }
  func.func @transform_0(%arg0: i32, %arg1: i32) -> (i32, i32, i32) {
    %c0_i32 = arith.constant 0 : i32
    %c0_i32_0 = arith.constant 0 : i32
    return %arg0, %arg1, %c0_i32 : i32, i32, i32
  }
  func.func @transform_1(%arg0: i32, %arg1: i32) -> (i32, i32, i32) {
    %c0_i32 = arith.constant 0 : i32
    %c0_i32_0 = arith.constant 0 : i32
    %c0_i32_1 = arith.constant 0 : i32
    return %arg0, %c0_i32, %c0_i32_0 : i32, i32, i32
  }
  func.func @transform_2(%arg0: i32, %arg1: i32) -> (i32, i32) {
    %c0_i32 = arith.constant 0 : i32
    %c0_i32_0 = arith.constant 0 : i32
    %c0_i32_1 = arith.constant 0 : i32
    return %c0_i32, %c0_i32_0 : i32, i32
  }
  func.func @transform_3(%arg0: i32, %arg1: i32) -> (i32, i32) {
    %c0_i32 = arith.constant 0 : i32
    %c0_i32_0 = arith.constant 0 : i32
    %c0_i32_1 = arith.constant 0 : i32
    return %c0_i32, %c0_i32_0 : i32, i32
  }
  func.func @transform_4(%arg0: i32, %arg1: i32) -> (i32, i32) {
    %c0_i32 = arith.constant 0 : i32
    %c0_i32_0 = arith.constant 0 : i32
    %c0_i32_1 = arith.constant 0 : i32
    return %c0_i32, %c0_i32_0 : i32, i32
  }
  func.func @transform_5(%arg0: i32, %arg1: i32) -> (i32, i32) {
    %c0_i32 = arith.constant 0 : i32
    %c0_i32_0 = arith.constant 0 : i32
    %c0_i32_1 = arith.constant 0 : i32
    return %c0_i32, %c0_i32_0 : i32, i32
  }
  func.func @transform_6(%arg0: i32, %arg1: i32) -> (i32, i32, i32) {
    %c0_i32 = arith.constant 0 : i32
    %c0_i32_0 = arith.constant 0 : i32
    return %arg0, %arg1, %c0_i32 : i32, i32, i32
  }
  func.func @transform_7(%arg0: i32, %arg1: i32) -> (i32, i32, i32) {
    %c0_i32 = arith.constant 0 : i32
    %c0_i32_0 = arith.constant 0 : i32
    return %arg0, %arg1, %c0_i32 : i32, i32, i32
  }
}

</mosaic_0001>

<bundles_post_ra>
// kernel: tpu_custom_call.1
= control target key start
LH: loop header
LB: loop body
LE: loop exit
PB: predicated region body
PF: predicated region fallthrough
CT: control target
= control target key end

     0   :  { %13 = vsyncpa [#allocation3], 0  ;;  %s1279_s0 = inlined_call_operand.vmem [shape: f32[2,8,32], index: 0, kind: input, shape index: {}]   ;;  %s1280_s1 = inlined_call_operand.vmem [shape: f32[2,8,32], index: 1, kind: input, shape index: {}]   ;;  %s1281_s2 = inlined_call_operand.vmem [shape: f32[32,64], index: 2, kind: input, shape index: {}]   ;;  %s1282_s3 = inlined_call_operand.vmem [shape: f32[1,64], index: 3, kind: input, shape index: {}]   ;;  %s1283_s4 = inlined_call_operand.vmem [shape: f32[64,32], index: 4, kind: input, shape index: {}]   ;;  %s1284_s5 = inlined_call_operand.vmem [shape: f32[1,32], index: 5, kind: input, shape index: {}]   ;;  %s1285_s6 = inlined_call_operand.hbm [shape: f32[2,8,32], index: 6, kind: output, shape index: {0}]   ;;  %s1286_s7 = inlined_call_operand.hbm [shape: f32[2,8,8], index: 7, kind: output, shape index: {1}]  }
   0x1   :  { %15 = vsyncpa [#allocation3 + $0x1], 0 }
   0x2   :  { %16 = vsyncpa [#allocation5], 0 }
   0x3   :  { %18 = vsyncpa [#allocation5 + $0x1], 0  ;;  %s1057_s24 = smov 0   ;;  %s1059_s25 = smov 0  }
   0x4   :  { %s1061_s26 = smov 0   ;;  %s1063_s27 = smov 0  }
   0x5   :  { %s1065_s28 = smov 0   ;;  %s1067_s29 = smov 0  }
   0x6 LB: > { %s758_s30 = sadd.s32 4294967295, %s1011_s29   ;;  %s759_s8 = sadd.s32 4294967294, %s1011_s29   ;;  %s1011_s29 = sphi %s1067_s29, %s24_s29   ;;  %s1007_s28 = sphi %s1065_s28, %s1295_s28   ;;  %s1003_s27 = sphi %s1063_s27, %s1294_s27   ;;  %s999_s26 = sphi %s1061_s26, %s1293_s26   ;;  %s995_s25 = sphi %s1059_s25, %s1292_s25   ;;  %s991_s24 = sphi %s1057_s24, %s1291_s24  }
   0x7   : > { %s36_s9 = sadd.s32 1, %s1007_s28  ;;  %s183_s10 = sadd.s32 1, %s999_s26 }
   0x8   : > { %p38_p0 = scmp.ge.s32.totalorder %s36_s9, 2  ;;  %p193_p1 = scmp.ne.s32.totalorder %s999_s26, %s995_s25 }
   0x9   : > { %p194_p2 = scmp.eq.s32.totalorder %s758_s30, 1  ;;  %p199_p3 = scmp.ne.s32.totalorder %s995_s25, %s991_s24 }
   0xa   : > { %s1297_s9 = smov (%p38_p0, %s36_s9), 0  ;;  %p200_p5 = scmp.eq.s32.totalorder %s759_s8, 1 }
   0xb   : > { %p1097_p4 = por %p194_p2, %p193_p1  ;;  %s178_s12 = ssub.s32 %s1007_s28, %s1297_s9 }
   0xc   : > { %p762_p6 = scmp.ge.s32.totalorder %s1011_s29, 1  ;;  %p181_p7 = scmp.eq.s32.totalorder %s178_s12, 0 }
   0xd   : > { %p1104_p8 = por %p200_p5, %p199_p3  ;;  %p275_p9 = scmp.lt.s32.totalorder %s1011_s29, 3 }
   0xe   : > { %s1110_s14 = scalar_select %p181_p7, %s999_s26, %s183_s10  }
   0xf   : > { %p276_p10 = pnand %p762_p6, %p275_p9 }
  0x10   : > { %v332_v0 = vld [vmem:[%s1281_s2] sm:$0xff] (!%p276_p10)  ;;  %v333_v1 = vld [vmem:[%s1281_s2 + $0x8] sm:$0xff] (!%p276_p10)  ;;  %v334_v2 = vld [vmem:[%s1281_s2 + $0x10] sm:$0xff] (!%p276_p10)  ;;  %p318_p11 = scmp.lt.s32.totalorder (!%p276_p10), %s1003_s27, 1  ;;  %v1013_v3 = vmov (!%p276_p10), 0.0   ;;  %vm1014_vm0 = vmmov (!%p276_p10), 0  }
  0x11   : > { %279 = sbr.rel (%p276_p10) target bundleno = 1233 (0x4d1), region = 44  ;;  %795 = vmatprep.subr.bf16.mxu1 (!%p276_p10), %v1013_v3  ;;  %v336_v4 = vpack.c.bf16 (!%p276_p10), %v333_v1, %v332_v0  ;;  %v335_v5 = vld [vmem:[%s1281_s2 + $0x18] sm:$0xff] (!%p276_p10)  ;;  %799 = vmatprep.mubr.msk.bf16.mxu1 (!%p276_p10), %vm1014_vm0, %v1013_v3  ;;  %vm358_vm1 = vcmask (!%p276_p10), 261120   ;;  %v767_v15 = vld [vmem:[%s1282_s3] ss:$0 sm:$0xff] (!%p276_p10)  ;;  %vm512_vm2 = vcmask (!%p276_p10), 1043456  }
  0x12   : > { %811 = vmatprep.subr.bf16.mxu0 (!%p276_p10), %v1013_v3  ;;  %813 = vmatprep.mubr.msk.bf16.mxu0 (!%p276_p10), %vm1014_vm0, %v1013_v3  ;;  %v337_v6 = vpack.c.bf16 (!%p276_p10), %v335_v5, %v334_v2  ;;  %vm449_vm3 = vcmask (!%p276_p10), 523264   ;;  %vm496_vm4 = vcmask (!%p276_p10), 64512   ;;  %v338_v37 = vld [vmem:[%s1283_s4] sm:$0xff] (!%p276_p10)  ;;  %v339_v38 = vld [vmem:[%s1283_s4 + $0x8] sm:$0xff] (!%p276_p10)  ;;  %v340_v39 = vld [vmem:[%s1283_s4 + $0x10] sm:$0xff] (!%p276_p10)  ;;  %s1180_s19 = sand.u32 (!%p276_p10), 1, %s995_s25  }
  0x13   : > { %796 = vmatpush3.bf16.msra.mxu1 (!%p276_p10), %v336_v4  ;;  %v346_v40 = vpack.c.bf16 (!%p276_p10), %v339_v38, %v338_v37  ;;  %v341_v41 = vld [vmem:[%s1283_s4 + $0x18] sm:$0xff] (!%p276_p10)  ;;  %v342_v43 = vld [vmem:[%s1283_s4 + $0x20] sm:$0xff] (!%p276_p10)  ;;  %v343_v44 = vld [vmem:[%s1283_s4 + $0x28] sm:$0xff] (!%p276_p10)  ;;  %s763_s20 = sshll.u32 (!%p276_p10), %s1180_s19, 3  ;;  %s1287_s10 = sshll.u32 (!%p276_p10), %s1003_s27, 7 }
  0x14   : > { %797 = vmatprep.subr.bf16.mxu1 (!%p276_p10), %v1013_v3  ;;  %v347_v42 = vpack.c.bf16 (!%p276_p10), %v341_v41, %v340_v39  ;;  %v348_v45 = vpack.c.bf16 (!%p276_p10), %v343_v44, %v342_v43  ;;  %s317_s21 = scalar_lea.vmem (!%p276_p10), [#allocation4], %s763_s20  ;;  %v344_v50 = vld [vmem:[%s1283_s4 + $0x30] sm:$0xff] (!%p276_p10)  ;;  %v345_v51 = vld [vmem:[%s1283_s4 + $0x38] sm:$0xff] (!%p276_p10)  ;;  %s1200_s16 = scalar_lea.hbm (!%p276_p10), %s1286_s7, %s1287_s10 }
  0x15   : > { %v349_v52 = vpack.c.bf16 (!%p276_p10), %v345_v51, %v344_v50  ;;  %s614_s18 = scalar_lea.sflag (!%p276_p10), [#allocation5], %s1180_s19 }
  0x17   : > { %798 = vmatpush3.bf16.msra.mxu1 (!%p276_p10), %v337_v6 }
  0x18   : > { %s319_s23 = scalar_select %p318_p11, %s1003_s27, 1  ;;  %803 = vmatprep.subr.bf16.mxu1 %v1013_v3 }
  0x1a   : > { %s765_s30 = sshll.u32 %s319_s23, 3  ;;  %s1015_s23 = smov [#allocation4]  }
  0x1b   : > { %s324_s12 = scalar_lea.vmem %s1279_s0, %s765_s30  ;;  %s328_s17 = scalar_lea.vmem %s1280_s1, %s765_s30 }
  0x1c   : > { %v330_v7 = vld [vmem:[%s324_s12] sm:$0xff]  ;;  %s905_s30 = sshll.u32 %s1015_s23, 4  ;;  %s906_s30 = int_to_ptr.vmem [resolvable:$false] %s905_s30 }
  0x1d   : > { %v350_v8 = vpack.c.bf16 %v330_v7, %v330_v7  ;;  %v331_v9 = vld [vmem:[%s328_s17] sm:$0xff]  ;;  %s642_s17 = sshll.u32 %s317_s21, 4  ;;  %s907_s8 = scalar_lea.vmem %s906_s30, 256  ;;  %s643_s17 = int_to_ptr.vmem [resolvable:$true] %s642_s17 }
  0x1e   : > { %v402_v10 = vpack.c.bf16 %v331_v9, %v331_v9  ;;  %s901_s22 = scalar_lea.vmem %s643_s17, 128  ;;  %p908_p1 = scmp.lt.s32.totalorder %s643_s17, %s906_s30 }
  0x1f   : > { %800 = vmatmul.mubr.msk.bf16.vlgmr.msra.gmra.mrb[0].mxu1 %vm358_vm1, %v350_v8  ;;  %p902_p12 = scmp.ne.s32.totalorder %s643_s17, %s901_s22  ;;  %p909_p2 = scmp.lt.s32.totalorder %s907_s8, %s901_s22 }
  0x20   : > { %804 = vmatpush3.bf16.msra.mxu1 %v336_v4  ;;  %807 = vmatprep.mubr.msk.bf16.mxu1 %vm1014_vm0, %v1013_v3 }
  0x21   : > { %805 = vmatprep.subr.bf16.mxu1 %v1013_v3  ;;  %p903_p13 = pnand %p902_p12, %p1097_p4  ;;  %p910_p3 = por %p909_p2, %p908_p1 }
  0x23   : > { %p904_p0 = pneg %p903_p13 }
  0x24   : > { %806 = vmatpush3.bf16.msra.mxu1 %v337_v6 }
  0x25   : > { %817 = vmatprep.subr.bf16.mxu1 %v1013_v3  ;;  %p911_p5 = pnand %p910_p3, %p904_p0 }
  0x27   : > { %808 = vmatmul.mubr.msk.bf16.vlgmr.msra.gmra.mrb[4].mxu1 %vm358_vm1, %v402_v10 }
  0x28   : > { %819 = vmatprep.mubr.msk.bf16.mxu1 %vm1014_vm0, %v1013_v3 }
  0xf2   : > { %v396_v11 = vpop.f32.mrb[0].mxu1 }
  0xf3   : > { %v801_v12 = vpop.f32.mrb[1].mxu1  ;;  %v397_v20 = vadd.f32 %v767_v15, %v396_v11 }
  0xf4   : > { %v399_v13 = vpop.f32.mrb[2].mxu1 }
  0xf5   : > { %v802_v14 = vpop.f32.mrb[3].mxu1  ;;  %v446_v25 = vmul.f32 0.125, %v397_v20 }
  0xf7   : > { %v447_v26 = vpack.c.bf16 %v446_v25, %v446_v25 }
  0xfa   : > { %v440_v16 = vpop.f32.mrb[4].mxu1 }
  0xfb   : > { %v441_v17 = vadd.f32 %v767_v15, %v440_v16  ;;  %v809_v18 = vpop.f32.mrb[5].mxu1 }
  0xfc   : > { %v443_v19 = vpop.f32.mrb[6].mxu1 }
  0xfd   : > { %v448_v21 = vpack.c.bf16 %v441_v17, %v441_v17  ;;  %v810_v22 = vpop.f32.mrb[7].mxu1 }
  0xff   : > { %v513_v23 = vsel %vm512_vm2, %v448_v21, 0  ;;  %v454_v24 = vsel %vm449_vm3, %v448_v21, 0 }
 0x100   : > { %812 = vmatpush3.bf16.xpose.msra.mxu0 %v454_v24  ;;  %818 = vmatpush3.bf16.msra.mxu1 %v513_v23 }
 0x101   : > { %823 = vmatprep.subr.bf16.mxu0 %v1013_v3 }
 0x107   : > { %814 = vmatmul.mubr.msk.bf16.vlgmr.msra.gmra.mrb[0].mxu0 %vm449_vm3, %v447_v26 }
 0x108   : > { %831 = vmatprep.mubr.msk.bf16.mxu0 %vm1014_vm0, %v1013_v3  ;;  %824 = vmatpush3.bf16.msra.mxu0 %v346_v40 }
 0x109   : > { %825 = vmatprep.subr.bf16.mxu0 %v1013_v3 }
 0x10c   : > { %826 = vmatpush3.bf16.msra.mxu0 %v347_v42 }
 0x10d   : > { %827 = vmatprep.subr.bf16.mxu0 %v1013_v3 }
 0x110   : > { %828 = vmatpush3.bf16.msra.mxu0 %v348_v45 }
 0x111   : > { %829 = vmatprep.subr.bf16.mxu0 %v1013_v3 }
 0x114   : > { %830 = vmatpush3.bf16.msra.mxu0 %v349_v52 }
 0x1da   : > { %v490_v27 = vpop.f32.mrb[0].mxu0 }
 0x1db   : > { %v815_v28 = vpop.f32.mrb[1].mxu0  ;;  %v497_v29 = vsel %vm496_vm4, %v490_v27, -inf }
 0x1dc   : > { %498 = vmax.xlane.f32.xlu0 %v497_v29  ;;  %v493_v30 = vpop.f32.mrb[2].mxu0 }
 0x1dd   : > { %v816_v31 = vpop.f32.mrb[3].mxu0 }
 0x269   : > { %v499_v32 = vpop.xlane.xlu0 %498 }
 0x26a   : > { %v500_v33 = vsub.f32 %v490_v27, %v499_v32 }
 0x26c   : > { %v501_v34 = vmul.f32 1.442695, %v500_v33 }
 0x26e   : > { %897 = vpow2.f32 %v501_v34 }
 0x278   : > { %v898_v35 = vpop.eup %897 }
 0x279   : > { %v503_v36 = vsel %vm496_vm4, %v898_v35, 0.0 }
 0x27a   : > { %504 = vadd.xlane.f32.xlu0 %v503_v36 }
 0x307   : > { %v505_v46 = vpop.xlane.xlu0 %504 }
 0x308   : > { %899 = vrcp.f32 %v505_v46 }
 0x312   : > { %v900_v47 = vpop.eup %899 }
 0x313   : > { %v507_v48 = vmul.f32 %v900_v47, %v898_v35 }
 0x315   : > { %v508_v49 = vpack.c.bf16 %v507_v48, %v507_v48  ;;  %607 = vst.msk [vmem:[%s317_s21] sm:$0xff] %vm496_vm4, %v507_v48 }
 0x317   : > { %820 = vmatmul.mubr.msk.bf16.vlgmr.msra.gmra.mrb[8].mxu1 %vm496_vm4, %v508_v49 }
 0x3ea   : > { %v549_v53 = vpop.f32.mrb[8].mxu1 }
 0x3eb   : > { %v555_v54 = vpack.c.bf16 %v549_v53, %v549_v53  ;;  %v821_v55 = vpop.f32.mrb[9].mxu1 }
 0x3ec   : > { %v552_v56 = vpop.f32.mrb[10].mxu1 }
 0x3ed   : > { %v822_v57 = vpop.f32.mrb[11].mxu1  ;;  %832 = vmatmul.mubr.msk.bf16.vlgmr.msra.gmra.mrb[4].mxu0 %vm449_vm3, %v555_v54 }
 0x3ee   : > { %914 = shalt.err (!%p911_p5)
}
 0x3ef   : > { %s915_s21 = scalar_lea.hbm %s1200_s16, 128  ;;  %s919_s23 = scalar_lea.hbm %s1286_s7, 256 }
 0x3f0   : > { %p916_p6 = scmp.ne.s32.totalorder %s1200_s16, %s915_s21  ;;  %p920_p10 = scmp.lt.u32.totalorder %s1200_s16, %s1286_s7 }
 0x3f1   : > { %p921_p11 = scmp.lt.u32.totalorder %s919_s23, %s915_s21  ;;  %p923_p13 = scmp.lt.u32.totalorder %s915_s21, %s1200_s16 }
 0x3f2   : > { %p917_p7 = pnand %p916_p6, %p1097_p4 }
 0x3f3   : > { %p922_p12 = por %p921_p11, %p920_p10 }
 0x3f4   : > { %p918_p9 = pneg %p917_p7 }
 0x3f5   : > { %p924_p0 = por %p923_p13, %p922_p12 }
 0x3f7   : > { %p925_p1 = pnand %p924_p0, %p918_p9 }
 0x3f9   : > { %928 = shalt.err (!%p925_p1)
}
 0x3fa   : > { %836 = dma.vmem_to_hbm [thread:$0]  (%p1097_p4), %s643_s17, 128, %s1200_s16, %s614_s18   ;;  %v772_v58 = vld [vmem:[%s1284_s5] ss:$0 sm:$0xff] }
 0x3fb   : > { %s310_s10 = scalar_lea.vmem [#allocation2], %s763_s20  ;;  %s1290_s21 = sshll.u32 %s1003_s27, 7 }
 0x3fc   : > { %s628_s12 = sshll.u32 %s310_s10, 4  ;;  %s1230_s30 = scalar_lea.hbm %s1285_s6, %s1290_s21  ;;  %s1232_s12 = int_to_ptr.vmem [resolvable:$true] %s628_s12 }
 0x3fd   : > { %s609_s20 = scalar_lea.sflag [#allocation3], %s1180_s19  ;;  %s929_s16 = scalar_lea.vmem %s1232_s12, 128 }
 0x3fe   : > { %p930_p2 = scmp.ne.s32.totalorder %s1232_s12, %s929_s16  ;;  %s1016_s27 = smov [#allocation2]  }
 0x3ff   : > { %s933_s17 = sshll.u32 %s1016_s27, 4  ;;  %s934_s17 = int_to_ptr.vmem [resolvable:$false] %s933_s17 }
 0x400   : > { %p931_p3 = pnand %p930_p2, %p1097_p4  ;;  %s935_s18 = scalar_lea.vmem %s934_s17, 256 }
 0x401   : > { %p936_p6 = scmp.lt.s32.totalorder %s1232_s12, %s934_s17  ;;  %p937_p7 = scmp.lt.s32.totalorder %s935_s18, %s929_s16 }
 0x402   : > { %p932_p5 = pneg %p931_p3 }
 0x403   : > { %p938_p9 = por %p937_p7, %p936_p6 }
 0x405   : > { %p939_p10 = pnand %p938_p9, %p932_p5 }
 0x4c0   : > { %v600_v59 = vpop.f32.mrb[4].mxu0 }
 0x4c1   : > { %v601_v60 = vadd.f32 %v772_v58, %v600_v59  ;;  %v833_v61 = vpop.f32.mrb[5].mxu0 }
 0x4c2   : > { %v603_v62 = vpop.f32.mrb[6].mxu0 }
 0x4c3   : > { %v834_v63 = vpop.f32.mrb[7].mxu0  ;;  %606 = vst.msk [vmem:[%s310_s10] sm:$0xff] %vm358_vm1, %v601_v60 }
 0x4c4   : > { %942 = shalt.err (!%p939_p10)
}
 0x4c5   : > { %s943_s19 = scalar_lea.hbm %s1230_s30, 128  ;;  %s947_s10 = scalar_lea.hbm %s1285_s6, 256 }
 0x4c6   : > { %p944_p11 = scmp.ne.s32.totalorder %s1230_s30, %s943_s19  ;;  %p948_p0 = scmp.lt.u32.totalorder %s1230_s30, %s1285_s6 }
 0x4c7   : > { %p949_p1 = scmp.lt.u32.totalorder %s947_s10, %s943_s19  ;;  %p951_p3 = scmp.lt.u32.totalorder %s943_s19, %s1230_s30 }
 0x4c8   : > { %p945_p12 = pnand %p944_p11, %p1097_p4 }
 0x4c9   : > { %p950_p2 = por %p949_p1, %p948_p0 }
 0x4ca   : > { %p946_p13 = pneg %p945_p12 }
 0x4cb   : > { %p952_p5 = por %p951_p3, %p950_p2 }
 0x4cd   : > { %p953_p6 = pnand %p952_p5, %p946_p13 }
 0x4cf   : > { %956 = shalt.err (!%p953_p6)
}
 0x4d0   : > { %835 = dma.vmem_to_hbm [thread:$0]  (%p1097_p4), %s1232_s12, 128, %s1230_s30, %s609_s20  }
 0x4d1 PF: > { %p846_p7 = scmp.ge.s32.totalorder %s1011_s29, 2  ;;  %s654_s23 = sand.u32 1, %s991_s24  }
 0x4d2   : > { %s655_s16 = scalar_lea.sflag [#allocation3], %s654_s23 }
 0x4d3   : > { %p840_p9 = pnand %p846_p7, %p1104_p8 }
 0x4d5   : > { %982 = dma.done.wait (!%p840_p9), %s655_s16, 128  }
 0x4d6   : > { %984 = vsyncadd (!%p840_p9), %s655_s16, 4294967168  ;;  %s664_s27 = scalar_lea.sflag [#allocation5], %s654_s23 }
 0x4d7   : > { %986 = dma.done.wait (!%p840_p9), %s664_s27, 128  }
 0x4d8   : > { %988 = vsyncadd (!%p840_p9), %s664_s27, 4294967168  ;;  %s24_s29 = sadd.s32 1, %s1011_s29   ;;  %s1291_s24 = smov %s995_s25 }
 0x4d9   : > { %p21_p10 = scmp.ge.s32.totalorder %s24_s29, 4   ;;  %s1292_s25 = smov %s999_s26 }
 0x4da   : > { %s1293_s26 = smov %s1110_s14  ;;  %s1294_s27 = smov %s1007_s28 }
 0x4db   : > { %s1295_s28 = smov %s1297_s9  ;;  %23 = sbr.rel (!%p21_p10) target bundleno = 6 (0x6), region = 99 }
 0x4e2   :  { %669 = vsyncpa [#allocation3], 1 }
 0x4e3   :  { %671 = vsyncpa [#allocation3 + $0x1], 1 }
 0x4e4   :  { %672 = vsyncpa [#allocation5], 1 }
 0x4e5   :  { %674 = vsyncpa [#allocation5 + $0x1], 1 }

</bundles_post_ra>
